<compile_context>
chip_gen: v7x
topology: tpu7x:2x2x1
jax: 0.10.0
libtpu: 0.0.40
codegen_flags: <defaults>
</compile_context>

<pallas_src>
import functools
import numpy as np

import jax
import jax.numpy as jnp
from jax import lax
from jax.experimental import pallas as pl
from jax.experimental.pallas import tpu as pltpu


def _round_up(x, m):
    return (x + m - 1) // m * m


_F32_TINY = float(np.finfo(np.float32).tiny)


def _pick_vmem_limit():
    """Per-generation scoped-VMEM limit: ~3/4 of physical, capped at 96 MiB.

    v5e/v6e (128 MiB) -> 96 MiB; v7x (64 MiB) -> 48 MiB; fallback 48 MiB."""
    try:
        cap = int(pltpu.get_tpu_info().vmem_capacity_bytes)
    except Exception:  # pragma: no cover - conservative fallback if query fails
        cap = 64 << 20
    return max(32 << 20, min(cap * 3 // 4, 96 << 20))


def _acncc_kernel(te, n_way, n_pad, with_stats, sq_floor,
                  s_ref, slab_ref, q_ref, qlab_ref, scale_ref, out_ref):
    """Processes `te` episodes per grid step.

    s_ref:     (TE, S, D)  support embeddings (compute dtype, e.g. bf16)
    slab_ref:  (TE, 1, S)  int32 support labels (row layout -> transposed one-hot)
    q_ref:     (TE, Q, D)  query embeddings
    qlab_ref:  (TE, Q, 1)  int32 query labels
    scale_ref: (1, 1)      f32 learnable scale (SMEM)
    out_ref:   logits variant: (TE, Q, NP) f32   (NP = n_way padded to 128 lanes)
               stats  variant: (TE, 1, LW) f32   row = [loss, acc, pred_0.., 0...]
    """
    S = s_ref.shape[1]
    Q = q_ref.shape[1]
    NP = n_pad
    scale = scale_ref[0, 0]

    def episode(e, carry):
        s = s_ref[e]                                                  # (S, D)
        q = q_ref[e]                                                  # (Q, D)
        slab_row = slab_ref[e]                                        # (1, S)

        # ---- prototype *sums* via one-hot scatter-add; one-hot built already
        #      transposed so this is a plain NN matmul (no XLU transpose). The
        #      1/count of the mean cancels in the cosine, so no counts matmul.
        cls_s = lax.broadcasted_iota(jnp.int32, (NP, S), 0)
        onehot_t = (cls_s == slab_row).astype(s.dtype)                # (NP, S)
        prot_sums = lax.dot_general(
            onehot_t, s, (((1,), (0,)), ((), ())),
            preferred_element_type=jnp.float32)                       # (NP, D) f32

        # ---- row-normalize prototypes with rsqrt (EUP) instead of sqrt+div.
        #      Padded / empty classes -> zero rows (finite, no NaN).
        p_sq = jnp.sum(prot_sums * prot_sums, axis=-1, keepdims=True)
        prot_n = (prot_sums *
                  lax.rsqrt(jnp.maximum(p_sq, sq_floor))).astype(q.dtype)

        # ---- single cosine matmul (NT, flash-attention style); fold scale/||q||
        #      as a (Q,1) row-broadcast multiply afterwards.
        dots = lax.dot_general(
            q, prot_n, (((1,), (1,)), ((), ())),
            preferred_element_type=jnp.float32)                       # (Q, NP)
        qf = q.astype(jnp.float32)                                    # f32 elementwise (v5e-safe)
        q_sq = jnp.sum(qf * qf, axis=-1, keepdims=True)               # (Q, 1)
        logits = dots * (scale * lax.rsqrt(jnp.maximum(q_sq, sq_floor)))

        if not with_stats:
            out_ref[e] = logits                                       # (Q, NP)
            return carry

        # ---- log-softmax + mean NLL + accuracy over the *valid* classes only.
        qlab = qlab_ref[e]                                            # (Q, 1)
        cls_q = lax.broadcasted_iota(jnp.int32, (Q, NP), 1)
        valid = cls_q < n_way
        lmask = jnp.where(valid, logits, jnp.float32(-1e30))

        m = jnp.max(lmask, axis=-1, keepdims=True)
        shifted = lmask - m
        lse = jnp.log(jnp.sum(jnp.exp(shifted), axis=-1, keepdims=True))
        logp = shifted - lse                                          # (Q, NP)

        tgt = (qlab == cls_q).astype(jnp.float32)
        nll = -jnp.sum(logp * tgt, axis=-1, keepdims=True)            # (Q, 1)
        loss = jnp.sum(nll, axis=0, keepdims=True) * (1.0 / Q)        # (1, 1)

        # argmax (first maximal index) via iota + masked min
        preds = jnp.min(jnp.where(lmask >= m, cls_q, NP),
                        axis=-1, keepdims=True)                       # (Q, 1) int32
        acc = jnp.sum((preds == qlab).astype(jnp.float32),
                      axis=0, keepdims=True) * (1.0 / Q)              # (1, 1)

        # ---- pack [loss, acc, preds...] into ONE lane-dense row per episode.
        #      preds are moved from sublane- to lane-orientation via a masked
        #      scatter + sublane reduce (no reshape/relayout primitive needed).
        LW = out_ref.shape[-1]
        lane = lax.broadcasted_iota(jnp.int32, (1, LW), 1)
        row_q = lax.broadcasted_iota(jnp.int32, (Q, LW), 0)
        col = lax.broadcasted_iota(jnp.int32, (Q, LW), 1)
        preds_sc = jnp.where(col == row_q + 2, preds.astype(jnp.float32), 0.0)
        preds_row = jnp.sum(preds_sc, axis=0, keepdims=True)          # (1, LW)
        row = jnp.where(lane == 0, loss,
                        jnp.where(lane == 1, acc, preds_row))         # (1, LW)
        out_ref[e] = row
        return carry

    # Short, fixed trip count -> fully unrolled for LLO scheduler visibility.
    lax.fori_loop(0, te, episode, 0, unroll=True)


def adaptive_cosine_ncc_batched(support_embeddings, support_labels,
                                query_embeddings, query_labels,
                                scale, n_way, *,
                                return_logits=False,
                                compute_dtype=jnp.bfloat16,
                                eps=1e-30,
                                episodes_per_block=None,
                                max_episodes_per_block=8):
    """Batched episodes: support (E,S,D), support_labels (E,S), query (E,Q,D),
    query_labels (E,Q).

    Returns logits[E,Q,n_way] (f32) when return_logits=True, otherwise
    (loss[E] f32, acc[E] f32, preds[E,Q] int32) -- the loss path never writes the
    lane-padded logits slab back to HBM."""
    support = jnp.asarray(support_embeddings)
    query = jnp.asarray(query_embeddings)
    if compute_dtype is not None:
        cdt = jnp.dtype(compute_dtype)
        if support.dtype != cdt:
            support = support.astype(cdt)
        if query.dtype != cdt:
            query = query.astype(cdt)

    E, S, D = support.shape
    Q = query.shape[1]
    n_way = int(n_way)
    NP = _round_up(max(n_way, 1), 128)        # lane-dense class axis
    LW = _round_up(Q + 2, 128)                # [loss, acc, preds...] row width
    with_stats = not return_logits

    slab = jnp.asarray(support_labels, jnp.int32).reshape(E, 1, S)
    qlab = jnp.asarray(query_labels, jnp.int32).reshape(E, Q, 1)
    scale_arr = jnp.asarray(scale, jnp.float32).reshape(1, 1)

    # ---- size TE (episodes per block) from a VMEM budget that keeps
    #      double-buffered in-flight blocks <= ~24 MiB (safe on v7x's 64 MiB).
    esz = support.dtype.itemsize
    out_bytes = (LW * 4) if with_stats else (Q * NP * 4)
    per_ep = S * D * esz + Q * D * esz + S * 4 + Q * 4 + out_bytes
    vmem_limit = _pick_vmem_limit()
    block_budget = min(vmem_limit // 4, 12 << 20)

    if episodes_per_block is not None:
        te = max(1, int(episodes_per_block))
    else:
        te = max(1, min(max_episodes_per_block, block_budget // max(per_ep, 1)))
        if E >= 2:
            te = min(te, -(-E // 2))   # keep >=2 grid steps so both v7x TCs get work
    te = min(te, max(E, 1))

    # Pad the episode axis up to a multiple of TE (padded episodes are all-zero
    # -> finite garbage stats, sliced off below).
    E_pad = _round_up(E, te)
    if E_pad != E:
        pad = E_pad - E
        support = jnp.pad(support, ((0, pad), (0, 0), (0, 0)))
        query = jnp.pad(query, ((0, pad), (0, 0), (0, 0)))
        slab = jnp.pad(slab, ((0, pad), (0, 0), (0, 0)))
        qlab = jnp.pad(qlab, ((0, pad), (0, 0), (0, 0)))

    sq_floor = float(max(eps * eps, _F32_TINY))   # clamp on the *squared* norm
    kernel = functools.partial(_acncc_kernel, te, n_way, NP, with_stats, sq_floor)

    if with_stats:
        out_shape = jax.ShapeDtypeStruct((E_pad, 1, LW), jnp.float32)
        out_spec = pl.BlockSpec((te, 1, LW), lambda b: (b, 0, 0))
    else:
        out_shape = jax.ShapeDtypeStruct((E_pad, Q, NP), jnp.float32)
        out_spec = pl.BlockSpec((te, Q, NP), lambda b: (b, 0, 0))

    # TODO(synk): if profiling still shows exposed DMA at realistic sizes, add
    # pipeline_mode=pl.Buffered(3) on the two embedding in_specs.
    out = pl.pallas_call(
        kernel,
        grid=(E_pad // te,),                          # episode-block axis, pipelined
        out_shape=out_shape,
        in_specs=[
            pl.BlockSpec((te, S, D), lambda b: (b, 0, 0)),    # support embeddings
            pl.BlockSpec((te, 1, S), lambda b: (b, 0, 0)),    # support labels (row)
            pl.BlockSpec((te, Q, D), lambda b: (b, 0, 0)),    # query embeddings
            pl.BlockSpec((te, Q, 1), lambda b: (b, 0, 0)),    # query labels
            pl.BlockSpec((1, 1), lambda b: (0, 0),
                         memory_space=pltpu.MemorySpace.SMEM),  # learnable scale
        ],
        out_specs=out_spec,
        compiler_params=pltpu.CompilerParams(
            dimension_semantics=("parallel",),        # shard episode blocks across TCs
            vmem_limit_bytes=vmem_limit),
    )(support, slab, query, qlab, scale_arr)

    if return_logits:
        return out[:E, :, :n_way]                     # slice off lane/episode padding
    loss = out[:E, 0, 0]
    acc = out[:E, 0, 1]
    preds = out[:E, 0, 2:2 + Q].astype(jnp.int32)     # exact small ints stored as f32
    return loss, acc, preds


def adaptive_cosine_ncc(support_embeddings, support_labels,
                        query_embeddings, query_labels,
                        scale=10.0, return_logits=False, n_way=None,
                        eps=1e-30, compute_dtype=jnp.bfloat16):
    """JAX/Pallas equivalent of AdaptiveCosineNCC.forward (single episode).

    Note: with a single episode the grid has one step, so on v7x one TensorCore
    idles -- route multiple episodes through adaptive_cosine_ncc_batched when
    possible."""
    if n_way is None:
        # Fallback only: prefer passing n_way statically (this forces a host sync).
        n_way = int(np.unique(np.asarray(query_labels)).shape[0])

    s = jnp.asarray(support_embeddings)[None]
    q = jnp.asarray(query_embeddings)[None]
    slab = jnp.asarray(support_labels)[None]
    qlab = jnp.asarray(query_labels)[None]

    if return_logits:
        logits = adaptive_cosine_ncc_batched(
            s, slab, q, qlab, scale, n_way, return_logits=True,
            compute_dtype=compute_dtype, eps=eps)
        return logits[0]

    loss, acc, preds = adaptive_cosine_ncc_batched(
        s, slab, q, qlab, scale, n_way, return_logits=False,
        compute_dtype=compute_dtype, eps=eps)
    loss = loss[0]
    stats_dict = {"loss": float(loss), "acc": float(acc[0])}
    pred_dict = {"preds": np.asarray(preds[0]),
                 "labels": np.asarray(jnp.asarray(query_labels, jnp.int32))}
    return loss, stats_dict, pred_dict


def _reference_numpy(support, slab, query, qlab, scale, n_way, eps=1e-30):
    support, query = np.asarray(support, np.float32), np.asarray(query, np.float32)
    slab, qlab = np.asarray(slab), np.asarray(qlab)
    prots = np.stack([support[slab == i].mean(0) for i in range(n_way)])
    dots = query @ prots.T
    qn = np.maximum(np.linalg.norm(query, axis=-1, keepdims=True), eps)
    pn = np.maximum(np.linalg.norm(prots, axis=-1), eps)[None, :]
    logits = dots / (qn * pn) * scale
    m = logits.max(-1, keepdims=True)
    logp = logits - m - np.log(np.exp(logits - m).sum(-1, keepdims=True))
    loss = -logp[np.arange(len(qlab)), qlab].mean()
    preds = logits.argmax(-1)
    acc = (preds == qlab).mean()
    return logits, loss, acc, preds


if __name__ == "__main__":
    scale_param = 10.0  # nn.Parameter init from the module (deterministic)

    n_way, n_shot, n_query, D = 4, 4, 2, 32
    S, Q = n_way * n_shot, n_way * n_query

    key = jax.random.PRNGKey(0)
    k_s, k_q = jax.random.split(key)
    support = jax.random.normal(k_s, (S, D), jnp.float32)
    query = jax.random.normal(k_q, (Q, D), jnp.float32)
    slab = jnp.asarray(np.repeat(np.arange(n_way), n_shot), jnp.int32)
    qlab = jnp.asarray(np.repeat(np.arange(n_way), n_query), jnp.int32)

    ref_logits, ref_loss, ref_acc, ref_preds = _reference_numpy(
        support, slab, query, qlab, scale_param, n_way)

    # ---- f32 compute path: tight checks (return_logits and loss paths) ----
    logits_f32 = adaptive_cosine_ncc(support, slab, query, qlab,
                                     scale=scale_param, return_logits=True,
                                     n_way=n_way, compute_dtype=jnp.float32)
    jax.block_until_ready(logits_f32)
    np.testing.assert_allclose(np.asarray(logits_f32), ref_logits,
                               rtol=1e-4, atol=1e-4)

    loss, stats, pred_dict = adaptive_cosine_ncc(support, slab, query, qlab,
                                                 scale=scale_param, n_way=n_way,
                                                 compute_dtype=jnp.float32)
    jax.block_until_ready(loss)
    np.testing.assert_allclose(stats["loss"], ref_loss, rtol=1e-4, atol=1e-4)
    np.testing.assert_allclose(stats["acc"], ref_acc, rtol=1e-6, atol=1e-6)
    np.testing.assert_array_equal(pred_dict["preds"], ref_preds)

    # ---- batched episodes (E=3 -> 2 episode-blocks of TE=2, padded) ----
    E = 3
    keys = jax.random.split(jax.random.PRNGKey(1), 2 * E)
    sup_b = jnp.stack([jax.random.normal(keys[2 * i], (S, D), jnp.float32)
                       for i in range(E)])
    qry_b = jnp.stack([jax.random.normal(keys[2 * i + 1], (Q, D), jnp.float32)
                       for i in range(E)])
    slab_b = jnp.tile(slab[None], (E, 1))
    qlab_b = jnp.tile(qlab[None], (E, 1))

    loss_b, acc_b, preds_b = adaptive_cosine_ncc_batched(
        sup_b, slab_b, qry_b, qlab_b, scale_param, n_way, compute_dtype=jnp.float32)
    jax.block_until_ready(loss_b)
    logits_b = adaptive_cosine_ncc_batched(
        sup_b, slab_b, qry_b, qlab_b, scale_param, n_way,
        return_logits=True, compute_dtype=jnp.float32)
    jax.block_until_ready(logits_b)
    for e in range(E):
        rl, rloss, racc, rpred = _reference_numpy(sup_b[e], slab_b[e],
                                                  qry_b[e], qlab_b[e],
                                                  scale_param, n_way)
        np.testing.assert_allclose(np.asarray(logits_b[e]), rl, rtol=1e-4, atol=1e-4)
        np.testing.assert_allclose(float(loss_b[e]), rloss, rtol=1e-4, atol=1e-4)
        np.testing.assert_allclose(float(acc_b[e]), racc, rtol=1e-6, atol=1e-6)
        np.testing.assert_array_equal(np.asarray(preds_b[e]), rpred)

    # ---- default bf16 compute path (v6e/v7x fast path): loose checks ----
    logits_bf16 = adaptive_cosine_ncc(support, slab, query, qlab,
                                      scale=scale_param, return_logits=True,
                                      n_way=n_way)
    jax.block_until_ready(logits_bf16)
    np.testing.assert_allclose(np.asarray(logits_bf16), ref_logits,
                               rtol=0.05, atol=0.25)
    loss_bf, stats_bf, _ = adaptive_cosine_ncc(support, slab, query, qlab,
                                               scale=scale_param, n_way=n_way)
    jax.block_until_ready(loss_bf)
    np.testing.assert_allclose(stats_bf["loss"], ref_loss, rtol=0.1, atol=0.1)

    print("KERNEL_OK")
</pallas_src>

<mosaic_0001>
module attributes {stable_mosaic.version = 11 : i64} {
  func.func @_acncc_kernel(%arg0: i32, %arg1: memref<1x16x32xf32, #tpu.memory_space<vmem>>, %arg2: memref<1x1x16xi32, #tpu.memory_space<vmem>>, %arg3: memref<1x8x32xf32, #tpu.memory_space<vmem>>, %arg4: memref<1x8x1xi32, #tpu.memory_space<vmem>>, %arg5: memref<1x1xf32, #tpu.memory_space<smem>>, %arg6: memref<1x8x128xf32, #tpu.memory_space<vmem>>) attributes {dimension_semantics = [#tpu.dimension_semantics<parallel>], iteration_bounds = array<i64: 1>, scalar_prefetch = 0 : i64, scratch_operands = 0 : i64, tpu.core_type = #tpu.core_type<tc>, window_params = [{transform_indices = @transform_0, window_bounds = array<i64: 1, 16, 32>}, {transform_indices = @transform_1, window_bounds = array<i64: 1, 1, 16>}, {transform_indices = @transform_2, window_bounds = array<i64: 1, 8, 32>}, {transform_indices = @transform_3, window_bounds = array<i64: 1, 8, 1>}, {transform_indices = @transform_4, window_bounds = array<i64: 1, 1>}, {transform_indices = @transform_5, window_bounds = array<i64: 1, 8, 128>}]} {
    %c0 = arith.constant 0 : index
    %c0_0 = arith.constant 0 : index
    %0 = memref.load %arg5[%c0, %c0_0] : memref<1x1xf32, #tpu.memory_space<smem>>
    %c0_i32 = arith.constant 0 : i32
    %1 = arith.index_cast %c0_i32 : i32 to index
    %c0_1 = arith.constant 0 : index
    %c0_2 = arith.constant 0 : index
    %2 = vector.load %arg1[%1, %c0_1, %c0_2] : memref<1x16x32xf32, #tpu.memory_space<vmem>>, vector<1x16x32xf32>
    %3 = vector.shape_cast %2 : vector<1x16x32xf32> to vector<16x32xf32>
    %4 = arith.index_cast %c0_i32 : i32 to index
    %c0_3 = arith.constant 0 : index
    %c0_4 = arith.constant 0 : index
    %5 = vector.load %arg3[%4, %c0_3, %c0_4] : memref<1x8x32xf32, #tpu.memory_space<vmem>>, vector<1x8x32xf32>
    %6 = vector.shape_cast %5 : vector<1x8x32xf32> to vector<8x32xf32>
    %7 = arith.index_cast %c0_i32 : i32 to index
    %c0_5 = arith.constant 0 : index
    %c0_6 = arith.constant 0 : index
    %8 = vector.load %arg2[%7, %c0_5, %c0_6] : memref<1x1x16xi32, #tpu.memory_space<vmem>>, vector<1x1x16xi32>
    %9 = vector.shape_cast %8 : vector<1x1x16xi32> to vector<1x16xi32>
    %10 = tpu.iota {dimensions = array<i32: 0>} : vector<128x16xi32>
    %11 = vector.broadcast %9 : vector<1x16xi32> to vector<128x16xi32>
    %12 = arith.cmpi eq, %10, %11 : vector<128x16xi32>
    %13 = arith.extui %12 : vector<128x16xi1> to vector<128x16xi32>
    %14 = arith.sitofp %13 : vector<128x16xi32> to vector<128x16xf32>
    %cst = arith.constant dense<0.000000e+00> : vector<128x32xf32>
    %15 = tpu.matmul %14, %3, %cst {dimension_numbers = #tpu.dot_dimension_numbers<[1], [0], [0], [1], [0, 0, 1, 1], [], []>} : vector<128x16xf32>, vector<16x32xf32>, vector<128x32xf32> -> vector<128x32xf32>
    %16 = arith.mulf %15, %15 : vector<128x32xf32>
    %cst_7 = arith.constant dense<0.000000e+00> : vector<128xf32>
    %17 = vector.multi_reduction <add>, %16, %cst_7 [1] : vector<128x32xf32> to vector<128xf32>
    %18 = vector.shape_cast %17 : vector<128xf32> to vector<128x1xf32>
    %cst_8 = arith.constant 1.17549435E-38 : f32
    %19 = vector.broadcast %cst_8 : f32 to vector<128x1xf32>
    %20 = arith.maximumf %18, %19 : vector<128x1xf32>
    %21 = math.rsqrt %20 : vector<128x1xf32>
    %22 = vector.broadcast %21 : vector<128x1xf32> to vector<128x32xf32>
    %23 = arith.mulf %15, %22 : vector<128x32xf32>
    %cst_9 = arith.constant dense<0.000000e+00> : vector<8x128xf32>
    %24 = tpu.matmul %6, %23, %cst_9 {dimension_numbers = #tpu.dot_dimension_numbers<[1], [1], [0], [0], [0, 0, 1, 0], [], []>} : vector<8x32xf32>, vector<128x32xf32>, vector<8x128xf32> -> vector<8x128xf32>
    %25 = arith.mulf %6, %6 : vector<8x32xf32>
    %cst_10 = arith.constant dense<0.000000e+00> : vector<8xf32>
    %26 = vector.multi_reduction <add>, %25, %cst_10 [1] : vector<8x32xf32> to vector<8xf32>
    %27 = vector.shape_cast %26 : vector<8xf32> to vector<8x1xf32>
    %cst_11 = arith.constant 1.17549435E-38 : f32
    %28 = vector.broadcast %cst_11 : f32 to vector<8x1xf32>
    %29 = arith.maximumf %27, %28 : vector<8x1xf32>
    %30 = math.rsqrt %29 : vector<8x1xf32>
    %31 = vector.broadcast %0 : f32 to vector<8x1xf32>
    %32 = arith.mulf %31, %30 : vector<8x1xf32>
    %33 = vector.broadcast %32 : vector<8x1xf32> to vector<8x128xf32>
    %34 = arith.mulf %24, %33 : vector<8x128xf32>
    %35 = arith.index_cast %c0_i32 : i32 to index
    %c0_12 = arith.constant 0 : index
    %c0_13 = arith.constant 0 : index
    %36 = vector.load %arg6[%35, %c0_12, %c0_13] : memref<1x8x128xf32, #tpu.memory_space<vmem>>, vector<1x8x128xf32>
    %37 = vector.shape_cast %36 : vector<1x8x128xf32> to vector<8x128xf32>
    %38 = vector.shape_cast %34 : vector<8x128xf32> to vector<1x8x128xf32>
    tpu.vector_store %arg6[%35, %c0_12, %c0_13], %38 {strides = array<i32>} : memref<1x8x128xf32, #tpu.memory_space<vmem>>, vector<1x8x128xf32>,
    %c1_i32 = arith.constant 1 : i32
    return
  }
  func.func @transform_0(%arg0: i32) -> (i32, i32, i32) {
    %c0_i32 = arith.constant 0 : i32
    %c0_i32_0 = arith.constant 0 : i32
    %c0_i32_1 = arith.constant 0 : i32
    return %arg0, %c0_i32, %c0_i32_0 : i32, i32, i32
  }
  func.func @transform_1(%arg0: i32) -> (i32, i32, i32) {
    %c0_i32 = arith.constant 0 : i32
    %c0_i32_0 = arith.constant 0 : i32
    %c0_i32_1 = arith.constant 0 : i32
    return %arg0, %c0_i32, %c0_i32_0 : i32, i32, i32
  }
  func.func @transform_2(%arg0: i32) -> (i32, i32, i32) {
    %c0_i32 = arith.constant 0 : i32
    %c0_i32_0 = arith.constant 0 : i32
    %c0_i32_1 = arith.constant 0 : i32
    return %arg0, %c0_i32, %c0_i32_0 : i32, i32, i32
  }
  func.func @transform_3(%arg0: i32) -> (i32, i32, i32) {
    %c0_i32 = arith.constant 0 : i32
    %c0_i32_0 = arith.constant 0 : i32
    %c0_i32_1 = arith.constant 0 : i32
    return %arg0, %c0_i32, %c0_i32_0 : i32, i32, i32
  }
  func.func @transform_4(%arg0: i32) -> (i32, i32) {
    %c0_i32 = arith.constant 0 : i32
    %c0_i32_0 = arith.constant 0 : i32
    %c0_i32_1 = arith.constant 0 : i32
    return %c0_i32, %c0_i32_0 : i32, i32
  }
  func.func @transform_5(%arg0: i32) -> (i32, i32, i32) {
    %c0_i32 = arith.constant 0 : i32
    %c0_i32_0 = arith.constant 0 : i32
    %c0_i32_1 = arith.constant 0 : i32
    return %arg0, %c0_i32, %c0_i32_0 : i32, i32, i32
  }
}

</mosaic_0001>

<bundles_post_ra>
// kernel: tpu_custom_call.1
= control target key start
LH: loop header
LB: loop body
LE: loop exit
PB: predicated region body
PF: predicated region fallthrough
CT: control target
= control target key end

     0   :  { %11 = vsyncpa [#allocation4], 0  ;;  %s1090_s0 = inlined_call_operand.hbm [shape: f32[1,16,32], index: 0, kind: input, shape index: {}]   ;;  %s1091_s1 = inlined_call_operand.vmem [shape: s32[1,1,16], index: 1, kind: input, shape index: {}]   ;;  %s1092_s2 = inlined_call_operand.vmem [shape: f32[1,8,32], index: 2, kind: input, shape index: {}]   ;;  %s1093_s3 = inlined_call_operand.vmem [shape: s32[1,8,1], index: 3, kind: input, shape index: {}]   ;;  %s1094_s4 = inlined_call_operand.<no memory space> [shape: f32[1,1], index: 4, kind: input, shape index: {}]   ;;  %s1095_s5 = inlined_call_operand.hbm [shape: f32[1,8,128], index: 5, kind: output, shape index: {}]  }
   0x1   :  { %12 = vsyncpa [#allocation5], 0  ;;  %s836_s18 = smov [#allocation3]   ;;  %s788_s22 = scalar_lea.hbm %s1090_s0, 256 }
   0x2   :  { %s18_s19 = sshll.u32 %s836_s18, 4  ;;  %p789_p0 = scmp.ne.s32.totalorder %s1090_s0, %s788_s22  ;;  %s19_s19 = int_to_ptr.vmem [resolvable:$true] %s18_s19 }
   0x3   :  { %p792_p1 = scmp.lt.u32.totalorder %s788_s22, %s1090_s0 }
   0x5   :  { %p794_p2 = pnand %p792_p1, %p789_p0 }
   0x7   :  { %797 = shalt.err (!%p794_p2)
}
   0x8   :  { %s798_s26 = scalar_lea.vmem %s19_s19, 256  ;;  %p803_p4 = scmp.lt.s32.totalorder %s19_s19, %s19_s19 }
   0x9   :  { %p799_p3 = scmp.ne.s32.totalorder %s19_s19, %s798_s26  ;;  %p804_p5 = scmp.lt.s32.totalorder %s798_s26, %s798_s26 }
   0xb   :  { %p805_p6 = por %p804_p5, %p803_p4 }
   0xd   :  { %p806_p7 = pnand %p805_p6, %p799_p3 }
   0xf   :  { %809 = shalt.err (!%p806_p7)
}
  0x10   :  { %s837_s27 = smov 128   ;;  %s838_s28 = smov 8  }
  0x11   :  { %24 = dma.hbm_to_vmem [thread:$0]  %s1090_s0, 256, %s19_s19, [#allocation4], %s837_s27, %s837_s27, %s838_s28  }
  0x12   :  { %832 = dma.done.wait [#allocation4], 256  }
  0x13   :  { %833 = vsyncadd [#allocation4], 4294967040  ;;  %v41_v0 = vlaneseq  ;;  %v888_v4 = vld [vmem:[%s1091_s1] ss:$0 sm:$0xff]  ;;  %v38_v6 = vld [vmem:[#allocation3 + $0x8] sm:$0xff]  ;;  %vm110_vm0 = vcmask 130048  }
  0x14   :  { %v37_v5 = vld [vmem:[#allocation3] sm:$0xff]  ;;  %v839_v9 = vmov 0.0   ;;  %s842_s9 = smov [#allocation6]  }
  0x15   :  { %v42_v1 = vshrl.u32 %v41_v0, 7  ;;  %v711_v7 = vpack.c.bf16 %v38_v6, %v37_v5  ;;  %s554_s10 = sshll.u32 %s842_s9, 4  ;;  %s555_s10 = int_to_ptr.vmem [resolvable:$true] %s554_s10 }
  0x16   :  { %s810_s11 = scalar_lea.vmem %s555_s10, 128  ;;  %p815_p9 = scmp.lt.s32.totalorder %s555_s10, %s555_s10 }
  0x17   :  { %v43_v2 = vadd.s32 8, %v42_v1  ;;  %v44_v3 = vadd.s32 16, %v42_v1  ;;  %vm62_vm1 = vcmp.eq.s32.totalorder %v42_v1, %v888_v4  ;;  %v45_v8 = vadd.s32 24, %v42_v1  ;;  %712 = vmatprep.subr.bf16.mxu0 %v711_v7  ;;  %p811_p8 = scmp.ne.s32.totalorder %s555_s10, %s810_s11  ;;  %p816_p10 = scmp.lt.s32.totalorder %s810_s11, %s810_s11 }
  0x18   :  { %v564_v10 = vsel %vm62_vm1, 1.0, %v839_v9  ;;  %v46_v11 = vadd.s32 32, %v42_v1  ;;  %714 = vmatpush3.bf16.msra.mxu0 %v711_v7  ;;  %v47_v14 = vadd.s32 40, %v42_v1  ;;  %v48_v15 = vadd.s32 48, %v42_v1 }
  0x19   :  { %vm63_vm2 = vcmp.eq.s32.totalorder %v43_v2, %v888_v4  ;;  %vm64_vm3 = vcmp.eq.s32.totalorder %v44_v3, %v888_v4  ;;  %652 = vmatprep.mubr.msk.f32.mxu0 %vm110_vm0, %v564_v10  ;;  %vm65_vm4 = vcmp.eq.s32.totalorder %v45_v8, %v888_v4  ;;  %v49_v18 = vadd.s32 56, %v42_v1  ;;  %p817_p11 = por %p816_p10, %p815_p9 }
  0x1a   :  { %v565_v12 = vsel %vm63_vm2, 1.0, %v839_v9  ;;  %v566_v13 = vsel %vm64_vm3, 1.0, %v839_v9  ;;  %vm66_vm5 = vcmp.eq.s32.totalorder %v46_v11, %v888_v4  ;;  %v567_v16 = vsel %vm65_vm4, 1.0, %v839_v9 }
  0x1b   :  { %653 = vmatmul.mubr.msk.f32.vlgmr.msra.gmra.mrb[0].mxu0 %vm110_vm0, %v565_v12  ;;  %v568_v17 = vsel %vm66_vm5, 1.0, %v839_v9  ;;  %vm67_vm6 = vcmp.eq.s32.totalorder %v47_v14, %v888_v4  ;;  %vm68_vm7 = vcmp.eq.s32.totalorder %v48_v15, %v888_v4  ;;  %v50_v19 = vadd.s32 64, %v42_v1  ;;  %p818_p12 = pnand %p817_p11, %p811_p8 }
  0x1c   :  { %655 = vmatprep.mubr.msk.f32.mxu0 %vm110_vm0, %v566_v13  ;;  %v569_v20 = vsel %vm67_vm6, 1.0, %v839_v9  ;;  %v570_v21 = vsel %vm68_vm7, 1.0, %v839_v9  ;;  %vm69_vm8 = vcmp.eq.s32.totalorder %v49_v18, %v888_v4  ;;  %v51_v22 = vadd.s32 72, %v42_v1 }
  0x1d   :  { %vm70_vm9 = vcmp.eq.s32.totalorder %v50_v19, %v888_v4  ;;  %v52_v23 = vadd.s32 80, %v42_v1  ;;  %v571_v24 = vsel %vm69_vm8, 1.0, %v839_v9  ;;  %v53_v26 = vadd.s32 88, %v42_v1 }
  0x1e   :  { %v572_v25 = vsel %vm70_vm9, 1.0, %v839_v9  ;;  %vm71_vm10 = vcmp.eq.s32.totalorder %v51_v22, %v888_v4  ;;  %v54_v27 = vadd.s32 96, %v42_v1  ;;  %v55_v30 = vadd.s32 104, %v42_v1 }
  0x1f   :  { %656 = vmatmul.mubr.msk.f32.gmra.mrb[2].mxu0 %vm110_vm0, %v567_v16  ;;  %vm72_vm11 = vcmp.eq.s32.totalorder %v52_v23, %v888_v4  ;;  %v573_v28 = vsel %vm71_vm10, 1.0, %v839_v9  ;;  %vm73_vm12 = vcmp.eq.s32.totalorder %v53_v26, %v888_v4  ;;  %v56_v31 = vadd.s32 112, %v42_v1 }
  0x20   :  { %658 = vmatprep.mubr.msk.f32.mxu0 %vm110_vm0, %v568_v17  ;;  %v574_v29 = vsel %vm72_vm11, 1.0, %v839_v9  ;;  %vm74_vm13 = vcmp.eq.s32.totalorder %v54_v27, %v888_v4  ;;  %v575_v32 = vsel %vm73_vm12, 1.0, %v839_v9  ;;  %vm75_vm14 = vcmp.eq.s32.totalorder %v55_v30, %v888_v4 }
  0x21   :  { %v576_v33 = vsel %vm74_vm13, 1.0, %v839_v9  ;;  %v57_v34 = vadd.s32 120, %v42_v1  ;;  %vm76_vm15 = vcmp.eq.s32.totalorder %v56_v31, %v888_v4  ;;  %v577_v35 = vsel %vm75_vm14, 1.0, %v839_v9 }
  0x22   :  { %v578_v36 = vsel %vm76_vm15, 1.0, %v839_v9  ;;  %vm320_vm2 = vcmask 261120   ;;  %v840_v23 = vmov 0.0|0.0  }
  0x23   :  { %659 = vmatmul.mubr.msk.f32.gmra.mrb[4].mxu0 %vm110_vm0, %v569_v20  ;;  %vm77_vm1 = vcmp.eq.s32.totalorder %v57_v34, %v888_v4  ;;  %715 = vmatprep.subr.bf16.mxu1 %v840_v23  ;;  %vm1032_vm3 = vmpackc.low %vm320_vm2, %vm320_vm2 }
  0x24   :  { %661 = vmatprep.mubr.msk.f32.mxu0 %vm110_vm0, %v570_v21  ;;  %v579_v37 = vsel %vm77_vm1, 1.0, %v839_v9 }
  0x27   :  { %662 = vmatmul.mubr.msk.f32.gmra.mrb[6].mxu0 %vm110_vm0, %v571_v24  ;;  %v1023_v24 = vld [vmem:[%s1092_s2] sm:$0xff] }
  0x28   :  { %664 = vmatprep.mubr.msk.f32.mxu0 %vm110_vm0, %v572_v25  ;;  %v538_v25 = vmul.f32 %v1023_v24, %v1023_v24 }
  0x2a   :  { %v539_v26 = vsel %vm320_vm2, %v538_v25, 0.0 }
  0x2b   :  { %665 = vmatmul.mubr.msk.f32.gmra.mrb[8].mxu0 %vm110_vm0, %v573_v28 }
  0x2c   :  { %667 = vmatprep.mubr.msk.f32.mxu0 %vm110_vm0, %v574_v29 }
  0x2f   :  { %668 = vmatmul.mubr.msk.f32.gmra.mrb[10].mxu0 %vm110_vm0, %v575_v32 }
  0x30   :  { %670 = vmatprep.mubr.msk.f32.mxu0 %vm110_vm0, %v576_v33 }
  0x33   :  { %671 = vmatmul.mubr.msk.f32.gmra.mrb[12].mxu0 %vm110_vm0, %v577_v35 }
  0x34   :  { %673 = vmatprep.mubr.msk.f32.mxu0 %vm110_vm0, %v578_v36 }
  0x37   :  { %674 = vmatmul.mubr.msk.f32.gmra.mrb[14].mxu0 %vm110_vm0, %v579_v37  ;;  %vm841_vm0 = vmmov 0  }
  0x38   :  { %708 = vmatprep.mubr.msk.f32.mxu1 %vm841_vm0, %v839_v9 }
  0xee   :  { %v938_v38 = vpop.f32.mrb[0].mxu0 }
  0xef   :  { %v940_v39 = vpop.f32.mrb[1].mxu0  ;;  %v305_v41 = vmul.f32 %v938_v38, %v938_v38 }
  0xf0   :  { %v304_v40 = vmul.f32 %v940_v39, %v940_v39 }
  0xf1   :  { %v324_v48 = vsel %vm320_vm2, %v305_v41, 0.0 }
  0xf2   :  { %v946_v42 = vpop.f32.mrb[2].mxu0  ;;  %v321_v43 = vsel %vm320_vm2, %v304_v40, 0.0 }
  0xf3   :  { %322 = vadd.xlane.f32.xlu0 %v321_v43  ;;  %v949_v44 = vpop.f32.mrb[3].mxu0  ;;  %v307_v45 = vmul.f32 %v946_v42, %v946_v42 }
  0xf4   :  { %v306_v46 = vmul.f32 %v949_v44, %v949_v44 }
  0xf5   :  { %v330_v53 = vsel %vm320_vm2, %v307_v45, 0.0 }
  0xf6   :  { %v955_v47 = vpop.f32.mrb[4].mxu0  ;;  %v327_v49 = vsel %vm320_vm2, %v306_v46, 0.0 }
  0xf7   :  { %325 = vadd.xlane.f32.xlu0 %v324_v48  ;;  %328 = vadd.xlane.f32.xlu1 %v327_v49  ;;  %v959_v50 = vpop.f32.mrb[5].mxu0  ;;  %v309_v51 = vmul.f32 %v955_v47, %v955_v47 }
  0xf8   :  { %v308_v52 = vmul.f32 %v959_v50, %v959_v50 }
  0xf9   :  { %v336_v59 = vsel %vm320_vm2, %v309_v51, 0.0 }
  0xfa   :  { %v966_v54 = vpop.f32.mrb[6].mxu0  ;;  %v333_v55 = vsel %vm320_vm2, %v308_v52, 0.0 }
  0xfb   :  { %331 = vadd.xlane.f32.xlu1 %v330_v53  ;;  %334 = vadd.xlane.f32.xlu0 %v333_v55  ;;  %v969_v56 = vpop.f32.mrb[7].mxu0  ;;  %v311_v57 = vmul.f32 %v966_v54, %v966_v54 }
  0xfc   :  { %v310_v58 = vmul.f32 %v969_v56, %v969_v56 }
  0xfd   :  { %v342_v1 = vsel %vm320_vm2, %v311_v57, 0.0 }
  0xfe   :  { %v976_v60 = vpop.f32.mrb[8].mxu0  ;;  %v339_v61 = vsel %vm320_vm2, %v310_v58, 0.0 }
  0xff   :  { %337 = vadd.xlane.f32.xlu1 %v336_v59  ;;  %340 = vadd.xlane.f32.xlu0 %v339_v61  ;;  %v979_v62 = vpop.f32.mrb[9].mxu0  ;;  %v313_v63 = vmul.f32 %v976_v60, %v976_v60 }
 0x100   :  { %v312_v0 = vmul.f32 %v979_v62, %v979_v62 }
 0x101   :  { %v348_v7 = vsel %vm320_vm2, %v313_v63, 0.0 }
 0x102   :  { %v986_v2 = vpop.f32.mrb[10].mxu0  ;;  %v345_v3 = vsel %vm320_vm2, %v312_v0, 0.0 }
 0x103   :  { %343 = vadd.xlane.f32.xlu1 %v342_v1  ;;  %346 = vadd.xlane.f32.xlu0 %v345_v3  ;;  %v989_v4 = vpop.f32.mrb[11].mxu0  ;;  %v315_v5 = vmul.f32 %v986_v2, %v986_v2 }
 0x104   :  { %v314_v6 = vmul.f32 %v989_v4, %v989_v4 }
 0x105   :  { %v354_v14 = vsel %vm320_vm2, %v315_v5, 0.0 }
 0x106   :  { %v996_v8 = vpop.f32.mrb[12].mxu0  ;;  %v351_v10 = vsel %vm320_vm2, %v314_v6, 0.0 }
 0x107   :  { %349 = vadd.xlane.f32.xlu1 %v348_v7  ;;  %352 = vadd.xlane.f32.xlu0 %v351_v10  ;;  %v999_v11 = vpop.f32.mrb[13].mxu0  ;;  %v317_v12 = vmul.f32 %v996_v8, %v996_v8 }
 0x108   :  { %v316_v13 = vmul.f32 %v999_v11, %v999_v11 }
 0x109   :  { %v360_v20 = vsel %vm320_vm2, %v317_v12, 0.0 }
 0x10a   :  { %v1006_v15 = vpop.f32.mrb[14].mxu0  ;;  %v357_v16 = vsel %vm320_vm2, %v316_v13, 0.0 }
 0x10b   :  { %355 = vadd.xlane.f32.xlu1 %v354_v14  ;;  %358 = vadd.xlane.f32.xlu0 %v357_v16  ;;  %v1009_v17 = vpop.f32.mrb[15].mxu0  ;;  %v319_v18 = vmul.f32 %v1006_v15, %v1006_v15 }
 0x10c   :  { %v318_v19 = vmul.f32 %v1009_v17, %v1009_v17 }
 0x10d   :  { %v366_v22 = vsel %vm320_vm2, %v319_v18, 0.0 }
 0x10e   :  { %v363_v21 = vsel %vm320_vm2, %v318_v19, 0.0 }
 0x10f   :  { %361 = vadd.xlane.f32.xlu1 %v360_v20  ;;  %364 = vadd.xlane.f32.xlu0 %v363_v21 }
 0x113   :  { %367 = vadd.xlane.f32.xlu1 %v366_v22  ;;  %540 = vadd.xlane.f32.xlu0 %v539_v26 }
 0x180   :  { %v323_v27 = vpop.xlane.xlu0 %322 }
 0x181   :  { %v369_v28 = vmax.f32 %v323_v27, 1.1754944e-38 }
 0x183   :  { %754 = vrsqrt.f32 %v369_v28 }
 0x184   :  { %v326_v29 = vpop.xlane.xlu0 %325  ;;  %v329_v30 = vpop.xlane.xlu1 %328 }
 0x185   :  { %v370_v31 = vmax.f32 %v326_v29, 1.1754944e-38  ;;  %v371_v32 = vmax.f32 %v329_v30, 1.1754944e-38 }
 0x187   :  { %756 = vrsqrt.f32 %v370_v31 }
 0x188   :  { %v332_v9 = vpop.xlane.xlu1 %331  ;;  %v335_v33 = vpop.xlane.xlu0 %334  ;;  %758 = vrsqrt.f32 %v371_v32 }
 0x189   :  { %v372_v34 = vmax.f32 %v332_v9, 1.1754944e-38  ;;  %v373_v35 = vmax.f32 %v335_v33, 1.1754944e-38 }
 0x18b   :  { %760 = vrsqrt.f32 %v372_v34 }
 0x18c   :  { %v338_v36 = vpop.xlane.xlu1 %337  ;;  %v341_v37 = vpop.xlane.xlu0 %340  ;;  %762 = vrsqrt.f32 %v373_v35 }
 0x18d   :  { %v374_v40 = vmax.f32 %v338_v36, 1.1754944e-38  ;;  %v375_v41 = vmax.f32 %v341_v37, 1.1754944e-38  ;;  %v755_v43 = vpop.eup %754 }
 0x18e   :  { %v401_v52 = vmul.f32 %v755_v43, %v940_v39 }
 0x18f   :  { %764 = vrsqrt.f32 %v374_v40 }
 0x190   :  { %v344_v45 = vpop.xlane.xlu1 %343  ;;  %v347_v46 = vpop.xlane.xlu0 %346  ;;  %766 = vrsqrt.f32 %v375_v41 }
 0x191   :  { %v757_v48 = vpop.eup %756  ;;  %v376_v49 = vmax.f32 %v344_v45, 1.1754944e-38  ;;  %v377_v51 = vmax.f32 %v347_v46, 1.1754944e-38 }
 0x192   :  { %v402_v53 = vmul.f32 %v757_v48, %v938_v38  ;;  %v759_v55 = vpop.eup %758 }
 0x193   :  { %768 = vrsqrt.f32 %v376_v49  ;;  %v403_v38 = vmul.f32 %v759_v55, %v949_v44 }
 0x194   :  { %v350_v58 = vpop.xlane.xlu1 %349  ;;  %v353_v59 = vpop.xlane.xlu0 %352  ;;  %v716_v61 = vpack.c.bf16 %v402_v53, %v401_v52  ;;  %770 = vrsqrt.f32 %v377_v51 }
 0x195   :  { %v761_v63 = vpop.eup %760  ;;  %v378_v0 = vmax.f32 %v350_v58, 1.1754944e-38  ;;  %v379_v1 = vmax.f32 %v353_v59, 1.1754944e-38 }
 0x196   :  { %718 = vmatpush3.bf16.xpose.msk.msra.mxu1 %vm1032_vm3, %v716_v61  ;;  %v404_v39 = vmul.f32 %v761_v63, %v946_v42  ;;  %v763_v3 = vpop.eup %762 }
 0x197   :  { %772 = vrsqrt.f32 %v378_v0  ;;  %719 = vmatprep.subr.bf16.mxu1 %v840_v23  ;;  %v405_v14 = vmul.f32 %v763_v3, %v959_v50 }
 0x198   :  { %v356_v5 = vpop.xlane.xlu1 %355  ;;  %v359_v6 = vpop.xlane.xlu0 %358  ;;  %v720_v7 = vpack.c.bf16 %v404_v39, %v403_v38  ;;  %774 = vrsqrt.f32 %v379_v1 }
 0x199   :  { %v765_v10 = vpop.eup %764  ;;  %v380_v12 = vmax.f32 %v356_v5, 1.1754944e-38  ;;  %v381_v13 = vmax.f32 %v359_v6, 1.1754944e-38 }
 0x19a   :  { %v406_v16 = vmul.f32 %v765_v10, %v955_v47  ;;  %v767_v18 = vpop.eup %766 }
 0x19b   :  { %776 = vrsqrt.f32 %v380_v12  ;;  %v407_v25 = vmul.f32 %v767_v18, %v969_v56 }
 0x19c   :  { %v362_v44 = vpop.xlane.xlu1 %361  ;;  %v365_v19 = vpop.xlane.xlu0 %364  ;;  %v724_v42 = vpack.c.bf16 %v406_v16, %v405_v14  ;;  %778 = vrsqrt.f32 %v381_v13 }
 0x19d   :  { %v769_v20 = vpop.eup %768  ;;  %v382_v21 = vmax.f32 %v362_v44, 1.1754944e-38  ;;  %v383_v22 = vmax.f32 %v365_v19, 1.1754944e-38 }
 0x19e   :  { %722 = vmatpush3.bf16.xpose.msk.msra.mxu1 %vm1032_vm3, %v720_v7  ;;  %v408_v26 = vmul.f32 %v769_v20, %v966_v54  ;;  %v771_v27 = vpop.eup %770 }
 0x19f   :  { %780 = vrsqrt.f32 %v382_v21  ;;  %723 = vmatprep.subr.bf16.mxu1 %v840_v23  ;;  %v409_v30 = vmul.f32 %v771_v27, %v979_v62 }
 0x1a0   :  { %v368_v47 = vpop.xlane.xlu1 %367  ;;  %v728_v50 = vpack.c.bf16 %v408_v26, %v407_v25  ;;  %782 = vrsqrt.f32 %v383_v22 }
 0x1a1   :  { %v773_v28 = vpop.eup %772  ;;  %v384_v29 = vmax.f32 %v368_v47, 1.1754944e-38 }
 0x1a2   :  { %v410_v31 = vmul.f32 %v773_v28, %v976_v60  ;;  %v775_v32 = vpop.eup %774 }
 0x1a3   :  { %784 = vrsqrt.f32 %v384_v29  ;;  %v411_v54 = vmul.f32 %v775_v32, %v989_v4 }
 0x1a4   :  { %v732_v9 = vpack.c.bf16 %v410_v31, %v409_v30 }
 0x1a5   :  { %v777_v33 = vpop.eup %776 }
 0x1a6   :  { %726 = vmatpush3.bf16.xpose.msk.msra.mxu1 %vm1032_vm3, %v724_v42  ;;  %v412_v56 = vmul.f32 %v777_v33, %v986_v2  ;;  %v779_v34 = vpop.eup %778 }
 0x1a7   :  { %727 = vmatprep.subr.bf16.mxu1 %v840_v23  ;;  %v413_v62 = vmul.f32 %v779_v34, %v999_v11 }
 0x1a8   :  { %v736_v35 = vpack.c.bf16 %v412_v56, %v411_v54 }
 0x1a9   :  { %v781_v36 = vpop.eup %780 }
 0x1aa   :  { %v414_v60 = vmul.f32 %v781_v36, %v996_v8  ;;  %v783_v37 = vpop.eup %782  ;;  %v541_v8 = vpop.xlane.xlu0 %540 }
 0x1ab   :  { %v415_v43 = vmul.f32 %v783_v37, %v1009_v17  ;;  %v542_v11 = vmax.f32 %v541_v8, 1.1754944e-38  ;;  %v544_v17 = vstv %s1094_s4 }
 0x1ac   :  { %v740_v40 = vpack.c.bf16 %v414_v60, %v413_v62 }
 0x1ad   :  { %v785_v41 = vpop.eup %784  ;;  %786 = vrsqrt.f32 %v542_v11 }
 0x1ae   :  { %730 = vmatpush3.bf16.xpose.msk.msra.mxu1 %vm1032_vm3, %v728_v50  ;;  %v416_v4 = vmul.f32 %v785_v41, %v1006_v15 }
 0x1af   :  { %731 = vmatprep.subr.bf16.mxu1 %v840_v23 }
 0x1b0   :  { %v744_v2 = vpack.c.bf16 %v416_v4, %v415_v43 }
 0x1b6   :  { %734 = vmatpush3.bf16.xpose.msk.msra.mxu1 %vm1032_vm3, %v732_v9 }
 0x1b7   :  { %735 = vmatprep.subr.bf16.mxu1 %v840_v23  ;;  %v787_v15 = vpop.eup %786 }
 0x1b8   :  { %v545_v45 = vmul.f32 %v787_v15, %v544_v17 }
 0x1be   :  { %738 = vmatpush3.bf16.xpose.msk.msra.mxu1 %vm1032_vm3, %v736_v35 }
 0x1bf   :  { %739 = vmatprep.subr.bf16.mxu1 %v840_v23 }
 0x1c6   :  { %742 = vmatpush3.bf16.xpose.msk.msra.mxu1 %vm1032_vm3, %v740_v40 }
 0x1c7   :  { %743 = vmatprep.subr.bf16.mxu1 %v840_v23 }
 0x1ce   :  { %746 = vmatpush3.bf16.xpose.msk.msra.mxu1 %vm1032_vm3, %v744_v2 }
 0x1d5   :  { %709 = vmatmul.mubr.msk.f32.vlgmr.msra.gmra.mrb[0].mxu1 %vm320_vm2, %v1023_v24 }
 0x2a8   :  { %v534_v46 = vpop.f32.mrb[0].mxu1 }
 0x2a9   :  { %v546_v48 = vmul.f32 %v545_v45, %v534_v46  ;;  %v710_v23 = vpop.f32.mrb[1].mxu1 }
 0x2ab   :  { %547 = vst [vmem:[#allocation6] sm:$0xff] %v546_v48 }
 0x2ac   :  { %821 = shalt.err (!%p818_p12)
}
 0x2ad   :  { %s822_s14 = scalar_lea.hbm %s1095_s5, 128 }
 0x2ae   :  { %p823_p13 = scmp.ne.s32.totalorder %s1095_s5, %s822_s14  ;;  %p826_p0 = scmp.lt.u32.totalorder %s822_s14, %s1095_s5 }
 0x2b0   :  { %p828_p1 = pnand %p826_p0, %p823_p13 }
 0x2b2   :  { %831 = shalt.err (!%p828_p1)
}
 0x2b3   :  { %557 = dma.vmem_to_hbm [thread:$0]  %s555_s10, 128, %s1095_s5, [#allocation5]  }
 0x2b4   :  { %834 = dma.done.wait [#allocation5], 128  }
 0x2b5   :  { %835 = vsyncadd [#allocation5], 4294967168 }
 0x2b6   :  { %561 = vsyncpa [#allocation4], 1 }
 0x2b7   :  { %562 = vsyncpa [#allocation5], 1 }

</bundles_post_ra>
